<compile_context>
chip_gen: v6e
topology: v6e:2x2x1
jax: 0.10.0
libtpu: 0.0.40
codegen_flags: <defaults>
</compile_context>

<pallas_src>
import jax
import jax.numpy as jnp
from jax.experimental import pallas as pl
from jax.experimental.pallas import tpu as pltpu

EPS = 1e-12  # torch.nn.functional.normalize default eps
TYPES = ('functions', 'classes', 'code')


def _cosine_kernel(t2g_ref, x_ref, q_ref, o_ref):
    """One (tm, D) tile of node features -> one lane-dense (1, tm) score row.

    t2g_ref: SMEM (num_tiles,) int32, tile index -> graph index (scalar prefetch)
    x_ref:   VMEM (tm, D) node-feature tile
    q_ref:   VMEM (G, D) pre-L2-normalized queries (one row per graph, resident)
    o_ref:   VMEM (1, 1, tm) cosine scores for this tile
    """
    g = t2g_ref[pl.program_id(0)]                      # graph id of this tile
    x = x_ref[...].astype(jnp.float32)                 # (tm, D)
    q = q_ref[pl.ds(g, 1), :].astype(jnp.float32)      # (1, D), already normalized

    contract = (((1,), (1,)), ((), ()))                # contract over D, no batch
    # q_hat . x_i for every row i, produced directly as a lane-dense (1, tm) row.
    dot = jax.lax.dot_general(q, x, contract,
                              preferred_element_type=jnp.float32)      # (1, tm)
    # sum_j x_ij^2 per row, also as a (1, tm) row (ones-vector mat-vec on MXU).
    ss = jax.lax.dot_general(jnp.ones_like(q), x * x, contract,
                             preferred_element_type=jnp.float32)       # (1, tm)
    # (x / max(||x||, eps)) . q_hat  ==  dot * rsqrt(max(ss, eps^2))
    inv_norm = jax.lax.rsqrt(jnp.maximum(ss, EPS * EPS))
    o_ref[...] = (dot * inv_norm).reshape(o_ref.shape)


def _fused_cosine_scores(x_pad, q_hat, tile_to_graph, tm):
    """x_pad: (num_tiles*tm, D); q_hat: (G, D) normalized; returns (num_tiles*tm,)."""
    num_tiles = x_pad.shape[0] // tm
    D = x_pad.shape[1]
    G = q_hat.shape[0]

    out = pl.pallas_call(
        _cosine_kernel,
        out_shape=jax.ShapeDtypeStruct((num_tiles, 1, tm), jnp.float32),
        grid_spec=pltpu.PrefetchScalarGridSpec(
            num_scalar_prefetch=1,
            grid=(num_tiles,),
            in_specs=[
                pl.BlockSpec((tm, D), lambda i, t2g: (i, 0)),   # node-feature tile
                pl.BlockSpec((G, D), lambda i, t2g: (0, 0)),    # all queries, resident
            ],
            out_specs=pl.BlockSpec((1, 1, tm), lambda i, t2g: (i, 0, 0)),
        ),
        compiler_params=pltpu.CompilerParams(
            dimension_semantics=("parallel",)),
    )(tile_to_graph, x_pad, q_hat)
    return out.reshape(-1)


def he_reranking_decoder_forward(batch, *, tm=512):
    """Pure-JAX/Pallas equivalent of HeRerankingDecoder.forward (cosine path).

    `batch` is a list of dict-graphs:
      graph = {
        'x_dict':      {'functions': (Nf, D), 'classes': (Nc, D), 'code': (Nd, D)},
        'map_indexes': {'functions': (Nf,),   'classes': (Nc,),   'code': (Nd,)},
        'query':       (1, D),
      }
    Returns the list of graphs with a 'scores' entry added (flat (Nf+Nc+Nd,)).
    """
    # Row tile: large for real workloads; no bigger than the largest graph needs
    # (rounded up to the sublane multiple of 8).
    max_n = max(sum(int(jnp.shape(g['x_dict'][t])[0]) for t in TYPES) for g in batch)
    tm_eff = max(8, min(tm, ((max_n + 7) // 8) * 8))

    x_parts, q_rows, tile_to_graph, spans = [], [], [], []
    offset = 0
    for g_idx, graph in enumerate(batch):
        xg = jnp.concatenate([jnp.asarray(graph['x_dict'][t]) for t in TYPES], axis=0)
        n = xg.shape[0]
        n_pad = ((n + tm_eff - 1) // tm_eff) * tm_eff
        if n_pad > n:
            xg = jnp.pad(xg, ((0, n_pad - n), (0, 0)))  # zero rows -> score 0, dropped
        x_parts.append(xg)
        tile_to_graph += [g_idx] * (n_pad // tm_eff)
        spans.append((offset, n))
        offset += n_pad

        q = jnp.asarray(graph['query'], jnp.float32).reshape(-1)   # query.squeeze(0)
        q_rows.append(q / jnp.maximum(jnp.linalg.norm(q), EPS))    # hoisted normalize

    x_all = jnp.concatenate(x_parts, axis=0)            # (num_tiles*tm_eff, D)
    q_all = jnp.stack(q_rows, axis=0)                   # (G, D)
    t2g = jnp.asarray(tile_to_graph, jnp.int32)         # (num_tiles,)

    flat_scores = _fused_cosine_scores(x_all, q_all, t2g, tm_eff)

    new_batch = []
    for graph, (start, n) in zip(batch, spans):
        type_scores = flat_scores[start:start + n]      # scores in type-concat order
        idx = jnp.concatenate(
            [jnp.asarray(graph['map_indexes'][t], jnp.int32) for t in TYPES])
        scores = jnp.zeros((n,), jnp.float32).at[idx].set(type_scores)
        g = dict(graph)
        g['scores'] = scores
        new_batch.append(g)
    return new_batch


def _reference_scores(graph):
    """Plain-JAX reference mirroring the PyTorch forward, for sanity check."""
    total = sum(int(graph['map_indexes'][t].shape[0]) for t in graph['map_indexes'])
    scores = jnp.zeros((total,), jnp.float32)
    q = graph['query'].reshape(-1)
    q_hat = q / jnp.maximum(jnp.linalg.norm(q), EPS)
    for node_type in TYPES:
        x = jnp.asarray(graph['x_dict'][node_type], jnp.float32)
        x_hat = x / jnp.maximum(jnp.linalg.norm(x, axis=1, keepdims=True), EPS)
        scores = scores.at[graph['map_indexes'][node_type]].set(x_hat @ q_hat)
    return scores


if __name__ == "__main__":
    key = jax.random.PRNGKey(0)
    D = 32            # hidden_channels
    N_PER_TYPE = 8    # nodes per type per graph
    NUM_GRAPHS = 2

    batch = []
    for g_idx in range(NUM_GRAPHS):
        key, kq, kperm, *kx = jax.random.split(key, 3 + len(TYPES))
        total = N_PER_TYPE * len(TYPES)
        perm = jax.random.permutation(kperm, total)
        x_dict, map_indexes = {}, {}
        for t_idx, t in enumerate(TYPES):
            x_dict[t] = jax.random.normal(kx[t_idx], (N_PER_TYPE, D), jnp.float32)
            map_indexes[t] = perm[t_idx * N_PER_TYPE:(t_idx + 1) * N_PER_TYPE]
        query = jax.random.normal(kq, (1, D), jnp.float32)
        batch.append({'x_dict': x_dict, 'map_indexes': map_indexes, 'query': query})

    out_batch = he_reranking_decoder_forward(batch)
    for g in out_batch:
        jax.block_until_ready(g['scores'])

    # Sanity check against a plain-JAX reference of the PyTorch semantics.
    for g_in, g_out in zip(batch, out_batch):
        ref = _reference_scores(g_in)
        assert jnp.allclose(g_out['scores'], ref, atol=1e-5), "mismatch vs reference"

    print("KERNEL_OK")
</pallas_src>

<mosaic_0001>
module attributes {stable_mosaic.version = 11 : i64} {
  func.func @_cosine_kernel(%arg0: i32, %arg1: memref<2xi32, #tpu.memory_space<smem>>, %arg2: memref<24x32xf32, #tpu.memory_space<vmem>>, %arg3: memref<2x32xf32, #tpu.memory_space<vmem>>, %arg4: memref<1x1x24xf32, #tpu.memory_space<vmem>>) attributes {dimension_semantics = [#tpu.dimension_semantics<parallel>], iteration_bounds = array<i64: 2>, scalar_prefetch = 1 : i64, scratch_operands = 0 : i64, tpu.core_type = #tpu.core_type<tc>, window_params = [{transform_indices = @transform_0, window_bounds = array<i64: 24, 32>}, {pipeline_mode = #tpu.pipeline_mode<synchronous>, transform_indices = @transform_1, window_bounds = array<i64: 2, 32>}, {transform_indices = @transform_2, window_bounds = array<i64: 1, 1, 24>}]} {
    %0 = arith.index_cast %arg0 : i32 to index
    %1 = memref.load %arg1[%0] : memref<2xi32, #tpu.memory_space<smem>>
    %c0 = arith.constant 0 : index
    %c0_0 = arith.constant 0 : index
    %2 = vector.load %arg2[%c0, %c0_0] : memref<24x32xf32, #tpu.memory_space<vmem>>, vector<24x32xf32>
    %3 = arith.index_cast %1 : i32 to index
    %c0_1 = arith.constant 0 : index
    %4 = vector.load %arg3[%3, %c0_1] : memref<2x32xf32, #tpu.memory_space<vmem>>, vector<1x32xf32>
    %cst = arith.constant dense<0.000000e+00> : vector<1x24xf32>
    %5 = tpu.matmul %4, %2, %cst {dimension_numbers = #tpu.dot_dimension_numbers<[1], [1], [0], [0], [0, 0, 1, 0], [], []>} : vector<1x32xf32>, vector<24x32xf32>, vector<1x24xf32> -> vector<1x24xf32>
    %cst_2 = arith.constant 1.000000e+00 : f32
    %6 = vector.broadcast %cst_2 : f32 to vector<1x32xf32>
    %7 = arith.mulf %2, %2 : vector<24x32xf32>
    %cst_3 = arith.constant dense<0.000000e+00> : vector<1x24xf32>
    %8 = tpu.matmul %6, %7, %cst_3 {dimension_numbers = #tpu.dot_dimension_numbers<[1], [1], [0], [0], [0, 0, 1, 0], [], []>} : vector<1x32xf32>, vector<24x32xf32>, vector<1x24xf32> -> vector<1x24xf32>
    %cst_4 = arith.constant 1.000000e-24 : f32
    %9 = vector.broadcast %cst_4 : f32 to vector<1x24xf32>
    %10 = arith.maximumf %8, %9 : vector<1x24xf32>
    %11 = math.rsqrt %10 : vector<1x24xf32>
    %12 = arith.mulf %5, %11 : vector<1x24xf32>
    %13 = vector.shape_cast %12 : vector<1x24xf32> to vector<1x1x24xf32>
    %c0_5 = arith.constant 0 : index
    %c0_6 = arith.constant 0 : index
    %c0_7 = arith.constant 0 : index
    %14 = vector.load %arg4[%c0_5, %c0_6, %c0_7] : memref<1x1x24xf32, #tpu.memory_space<vmem>>, vector<1x1x24xf32>
    tpu.vector_store %arg4[%c0_5, %c0_6, %c0_7], %13 {strides = array<i32>} : memref<1x1x24xf32, #tpu.memory_space<vmem>>, vector<1x1x24xf32>,
    return
  }
  func.func @transform_0(%arg0: i32, %arg1: memref<2xi32, #tpu.memory_space<smem>>) -> (i32, i32) {
    %c0_i32 = arith.constant 0 : i32
    %c0_i32_0 = arith.constant 0 : i32
    return %arg0, %c0_i32 : i32, i32
  }
  func.func @transform_1(%arg0: i32, %arg1: memref<2xi32, #tpu.memory_space<smem>>) -> (i32, i32) {
    %c0_i32 = arith.constant 0 : i32
    %c0_i32_0 = arith.constant 0 : i32
    %c0_i32_1 = arith.constant 0 : i32
    return %c0_i32, %c0_i32_0 : i32, i32
  }
  func.func @transform_2(%arg0: i32, %arg1: memref<2xi32, #tpu.memory_space<smem>>) -> (i32, i32, i32) {
    %c0_i32 = arith.constant 0 : i32
    %c0_i32_0 = arith.constant 0 : i32
    %c0_i32_1 = arith.constant 0 : i32
    return %arg0, %c0_i32, %c0_i32_0 : i32, i32, i32
  }
}

</mosaic_0001>

<bundles_post_ra>
// kernel: tpu_custom_call.1
= control target key start
LH: loop header
LB: loop body
LE: loop exit
PB: predicated region body
PF: predicated region fallthrough
CT: control target
= control target key end

     0   :  { %s687_s0 = inlined_call_operand.vmem [shape: s32[2], index: 0, kind: input, shape index: {}]   ;;  %s688_s1 = inlined_call_operand.vmem [shape: f32[48,32], index: 1, kind: input, shape index: {}]   ;;  %s689_s2 = inlined_call_operand.vmem [shape: f32[2,32], index: 2, kind: input, shape index: {}]   ;;  %s690_s3 = inlined_call_operand.hbm [shape: f32[2,1,24], index: 3, kind: output, shape index: {}]  }
   0x1   :  { %s8_s14 = sshll.u32 %s687_s0, 4  ;;  %s9_s14 = int_to_ptr.vmem [resolvable:$true] %s8_s14 }
   0x2   :  { %s485_s15 = scalar_lea.vmem %s9_s14, 16  ;;  %p490_p1 = scmp.lt.s32.totalorder %s9_s14, %s9_s14 }
   0x3   :  { %p486_p0 = scmp.ne.s32.totalorder %s9_s14, %s485_s15  ;;  %p491_p2 = scmp.lt.s32.totalorder %s485_s15, %s485_s15 }
   0x5   :  { %p492_p3 = por %p491_p2, %p490_p1 }
   0x7   :  { %p493_p4 = pnand %p492_p3, %p486_p0 }
   0x9   :  { %496 = shalt.err (!%p493_p4)  }
   0xa   :  { %s561_s16 = smov [#allocation3]  }
   0xb   :  { %11 = dma.vmem_to_smem %s9_s14, 16, %s561_s16, [#allocation2] }
   0xc   :  { %539 = dma.done.wait [#allocation2], 16 }
   0xd   :  { %540 = vsyncadd [#allocation2], 4294967280 }
   0xe   :  { %13 = sfence }
   0xf   :  { %14 = vsyncpa [#allocation5], 0 }
  0x10   :  { %16 = vsyncpa [#allocation5 + $0x1], 0  ;;  %s589_s17 = smov 0   ;;  %s591_s18 = smov 0  }
  0x11   :  { %s593_s0 = smov 0   ;;  %s595_s19 = smov 0  }
  0x12 LB: > { %s610_s20 = sadd.s32 4294967295, %s559_s19   ;;  %s398_s21 = sadd.s32 4294967294, %s559_s19   ;;  %s559_s19 = sphi %s595_s19, %s696_s19   ;;  %s555_s0 = sphi %s593_s0, %s695_s0   ;;  %s551_s18 = sphi %s591_s18, %s694_s18   ;;  %s547_s17 = sphi %s589_s17, %s693_s17  }
  0x13   : > { %s614_s22 = sadd.s32 1, %s559_s19   ;;  %s76_s23 = sadd.s32 1, %s555_s0 }
  0x14   : > { %s73_s24 = ssub.s32 %s559_s19, %s614_s22  ;;  %p86_p5 = scmp.ne.s32.totalorder %s555_s0, %s551_s18 }
  0x15   : > { %p74_p6 = scmp.eq.s32.totalorder %s73_s24, 0  ;;  %p87_p7 = scmp.eq.s32.totalorder %s610_s20, 1 }
  0x16   : > { %p92_p8 = scmp.ne.s32.totalorder %s551_s18, %s547_s17  ;;  %p93_p9 = scmp.eq.s32.totalorder %s398_s21, 1 }
  0x17   : > { %s625_s25 = scalar_select %p74_p6, %s555_s0, %s76_s23  }
  0x18   : > { %p627_p10 = por %p87_p7, %p86_p5  ;;  %p631_p11 = por %p93_p9, %p92_p8 }
  0x19   : > { %p401_p12 = scmp.ge.s32.totalorder %s559_s19, 1  ;;  %p123_p13 = scmp.lt.s32.totalorder %s559_s19, 3 }
  0x1b   : > { %p124_p0 = pnand %p401_p12, %p123_p13 }
  0x1c   : > { %s144_s28 = smul.u32 (!%p124_p0), 3, %s610_s20  ;;  %s150_s30 = sld [smem:[#allocation3 + %s610_s20]] (!%p124_p0) }
  0x1d   : > { %127 = sbr.rel (%p124_p0) target bundleno = 275 (0x113), region = 28  ;;  %s142_s10 = sand.u32 (!%p124_p0), 1, %s551_s18  }
  0x1e   : > { %p145_p1 = scmp.lt.s32.totalorder (!%p124_p0), %s144_s28, 5  ;;  %s411_s11 = sshll.u32 (!%p124_p0), %s610_s20, 4 }
  0x1f   : > { %s143_s12 = scalar_lea.vmem (!%p124_p0), [#allocation4], %s142_s10  ;;  %s340_s16 = scalar_lea.hbm (!%p124_p0), %s690_s3, %s411_s11 }
  0x20   : > { %s342_s13 = sshll.u32 (!%p124_p0), %s143_s12, 4  ;;  %s330_s21 = scalar_lea.sflag (!%p124_p0), [#allocation5], %s142_s10  ;;  %s343_s13 = int_to_ptr.vmem [resolvable:$true] %s342_s13 }
  0x21   : > { %s497_s23 = scalar_lea.vmem (!%p124_p0), %s343_s13, 16  ;;  %s565_s24 = smov (!%p124_p0), [#allocation4]  }
  0x22   : > { %v562_v0 = vmov 0.0   ;;  %vm563_vm0 = vmmov 0   ;;  %s698_s28 = smov (!%p145_p1, %s144_s28), 5  ;;  %vm156_vm1 = vcmask 261120   ;;  %s154_s9 = scalar_lea.vmem %s689_s2, %s150_s30  ;;  %v564_v8 = vmov 1.0  }
  0x23   : > { %431 = vmatprep.subr.mxu1 %v562_v0  ;;  %437 = vmatprep.mubr.msk.f32.mxu1 %vm563_vm0, %v562_v0  ;;  %s402_s29 = sshll.u32 %s698_s28, 3  ;;  %v155_v7 = vld [vmem:[%s154_s9] sm:$0x1]  ;;  %vm327_vm2 = vcmask 188416   ;;  %p498_p2 = scmp.ne.s32.totalorder %s343_s13, %s497_s23 }
  0x24   : > { %422 = vmatprep.subr.mxu0 %v562_v0  ;;  %428 = vmatprep.mubr.msk.f32.mxu0 %vm563_vm0, %v562_v0  ;;  %s148_s6 = scalar_lea.vmem %s688_s1, %s402_s29  ;;  %s501_s28 = sshll.u32 %s565_s24, 4  ;;  %s502_s28 = int_to_ptr.vmem [resolvable:$false] %s501_s28 }
  0x25   : > { %v153_v1 = vld [vmem:[%s148_s6 + $0x10] sm:$0xff]  ;;  %v152_v2 = vld [vmem:[%s148_s6 + $0x8] sm:$0xff]  ;;  %v151_v5 = vld [vmem:[%s148_s6] sm:$0xff]  ;;  %p499_p3 = pnand %p498_p2, %p627_p10  ;;  %s503_s20 = scalar_lea.vmem %s502_s28, 32 }
  0x26   : > { %v241_v3 = vmul.f32 %v153_v1, %v153_v1  ;;  %423 = vmatpush3.xpose.msk.msra.mxu0 %vm156_vm1, %v153_v1  ;;  %v240_v4 = vmul.f32 %v152_v2, %v152_v2  ;;  %v239_v6 = vmul.f32 %v151_v5, %v151_v5  ;;  %p504_p5 = scmp.lt.s32.totalorder %s343_s13, %s502_s28  ;;  %p505_p6 = scmp.lt.s32.totalorder %s503_s20, %s497_s23 }
  0x27   : > { %424 = vmatprep.subr.mxu0 %v562_v0  ;;  %p500_p4 = pneg %p499_p3 }
  0x28   : > { %432 = vmatpush3.xpose.msk.msra.mxu1 %vm156_vm1, %v241_v3  ;;  %p506_p7 = por %p505_p6, %p504_p5 }
  0x29   : > { %433 = vmatprep.subr.mxu1 %v562_v0 }
  0x2a   : > { %425 = vmatpush3.xpose.msk.msra.mxu0 %vm156_vm1, %v152_v2  ;;  %p507_p8 = pnand %p506_p7, %p500_p4 }
  0x2b   : > { %426 = vmatprep.subr.mxu0 %v562_v0 }
  0x2c   : > { %434 = vmatpush3.xpose.msk.msra.mxu1 %vm156_vm1, %v240_v4 }
  0x2d   : > { %435 = vmatprep.subr.mxu1 %v562_v0 }
  0x2e   : > { %427 = vmatpush3.xpose.msk.msra.mxu0 %vm156_vm1, %v151_v5 }
  0x30   : > { %436 = vmatpush3.xpose.msk.msra.mxu1 %vm156_vm1, %v239_v6 }
  0x31   : > { %429 = vmatmul.mubr.msk.f32.vlgmr.msra.gmra.mxu0 %vm156_vm1, %v155_v7 }
  0x33   : > { %438 = vmatmul.mubr.msk.f32.vlgmr.msra.gmra.mxu1 %vm156_vm1, %v564_v8 }
  0xf1   : > { %v235_v9 = vpop.f32.mrf.mxu0 }
  0xf3   : > { %v320_v10 = vpop.f32.mrf.mxu1  ;;  %v430_v11 = vpop.f32.mrf.mxu0 }
  0xf4   : > { %v324_v12 = vmax.f32 %v320_v10, 1e-24 }
  0xf5   : > { %v439_v13 = vpop.f32.mrf.mxu1 }
  0xf6   : > { %483 = vrsqrt.f32 %v324_v12 }
 0x103   : > { %v484_v14 = vpop.eup %483 }
 0x104   : > { %v326_v15 = vmul.f32 %v484_v14, %v235_v9 }
 0x106   : > { %328 = vst.msk [vmem:[%s143_s12] sm:$0x1] %vm327_vm2, %v326_v15 }
 0x107   : > { %510 = shalt.err (!%p507_p8)
}
 0x108   : > { %s511_s29 = scalar_lea.hbm %s340_s16, 16  ;;  %s515_s5 = scalar_lea.hbm %s690_s3, 32 }
 0x109   : > { %p512_p9 = scmp.ne.s32.totalorder %s340_s16, %s511_s29  ;;  %p516_p0 = scmp.lt.s32.totalorder %s340_s16, %s690_s3 }
 0x10a   : > { %p517_p1 = scmp.lt.s32.totalorder %s515_s5, %s511_s29 }
 0x10b   : > { %p513_p12 = pnand %p512_p9, %p627_p10 }
 0x10c   : > { %p518_p2 = por %p517_p1, %p516_p0 }
 0x10d   : > { %p514_p13 = pneg %p513_p12 }
 0x10f   : > { %p519_p3 = pnand %p518_p2, %p514_p13 }
 0x111   : > { %522 = shalt.err (!%p519_p3)
}
 0x112   : > { %440 = dma.vmem_to_hbm [thread:$0]  (%p627_p10), %s343_s13, 16, %s340_s16, %s330_s21  }
 0x113 PF: > { %p446_p4 = scmp.ge.s32.totalorder %s559_s19, 2  ;;  %s354_s8 = sand.u32 1, %s547_s17  }
 0x114   : > { %s355_s9 = scalar_lea.sflag [#allocation5], %s354_s8 }
 0x115   : > { %p443_p5 = pnand %p446_p4, %p631_p11 }
 0x117   : > { %p444_p6 = pneg %p443_p5 }
 0x119   : > { %542 = dma.done.wait (%p444_p6), %s355_s9, 16  }
 0x11a   : > { %544 = vsyncadd (%p444_p6), %s355_s9, 4294967280  ;;  %p19_p7 = scmp.ge.s32.totalorder %s614_s22, 4   ;;  %s693_s17 = smov %s551_s18 }
 0x11b   : > { %s694_s18 = smov %s555_s0  ;;  %s695_s0 = smov %s625_s25 }
 0x11c   : > { %s696_s19 = smov %s614_s22  ;;  %21 = sbr.rel (!%p19_p7) target bundleno = 18 (0x12), region = 64 }
 0x121   :  { %359 = vsyncpa [#allocation5], 1 }
 0x122   :  { %361 = vsyncpa [#allocation5 + $0x1], 1 }

</bundles_post_ra>
